<compile_context>
chip_gen: v6e
topology: v6e:2x2x1
jax: 0.10.0
libtpu: 0.0.40
codegen_flags: <defaults>
</compile_context>

<pallas_src>
import jax
import jax.numpy as jnp
from jax.experimental import pallas as pl
from jax.experimental.pallas import tpu as pltpu

KSIZE = 6                   # kernel_size
DIL = 9                     # dilation
PAD = DIL * (KSIZE - 1)     # 45 == chomp size == causal left padding
MARGIN = 128                # 128-aligned zero margin in the padded scratch


def _round_up(v, m):
    return ((v + m - 1) // m) * m


def tcn_kernel(x_ref, mask_ref, w1_ref, w2_ref, p_ref, out_ref, xs_ref, col_ref):
    """One tile of batch slots per grid step.

    x_ref    : (Cp, TW)  bf16   packed, causally left-padded input tile
    mask_ref : (1,  TW)  f32    1.0 on data lanes, 0.0 on per-slot pad lanes
    w1_ref   : (Cp, K*Cp) bf16  conv1 weight, flattened as [o, k*Cp + i]
    w2_ref   : (Cp, K*Cp) bf16  conv2 weight, flattened as [o, k*Cp + i]
    p_ref    : (Cp, 4)   f32    columns = (b1, b2, bn_scale, bn_shift)
    out_ref  : (Cp, TW)  f32    packed output (pad lanes/channels are junk;
                                dropped by the wrapper, never consume directly)
    xs_ref   : (Cp, MARGIN+TW)  bf16 scratch: zero margin + staged activation
    col_ref  : (K*Cp, TW)       bf16 scratch: im2col of the staged activation
    """
    Cp, TW = out_ref.shape

    b1 = p_ref[:, 0:1]
    b2 = p_ref[:, 1:2]
    scale = p_ref[:, 2:3]
    shift = p_ref[:, 3:4]
    mask = mask_ref[...]

    # Stage the input tile into the margin-padded scratch.  The margin is
    # zeroed unconditionally every step: cheap (Cp*128 bf16) and correct under
    # "parallel" grid semantics / megacore sharding (no cross-step state).
    xs_ref[:, :MARGIN] = jnp.zeros((Cp, MARGIN), xs_ref.dtype)
    xs_ref[:, MARGIN:] = x_ref[...]

    # im2col: K statically shifted, causally padded views -> col scratch.
    # Static lane offsets (83, 92, ..., 128); each misaligned slice is read
    # exactly once and then consumed by a single fused matmul.
    for k in range(KSIZE):
        off = MARGIN - PAD + k * DIL
        col_ref[k * Cp:(k + 1) * Cp, :] = xs_ref[:, off:off + TW]

    # ---- conv1: one fused bf16 matmul, f32 accumulate, bias + ReLU ----
    h = jnp.dot(w1_ref[...], col_ref[...], preferred_element_type=jnp.float32)
    # Mask zeroes each slot's left-pad lanes so the staged hidden activation is
    # itself causally left-padded for conv2 (junk there would break causality).
    h = jnp.maximum(h + b1, 0.0) * mask
    xs_ref[:, MARGIN:] = h.astype(xs_ref.dtype)   # margin is still zero

    # im2col of the (masked) hidden activation, reusing the col scratch.
    for k in range(KSIZE):
        off = MARGIN - PAD + k * DIL
        col_ref[k * Cp:(k + 1) * Cp, :] = xs_ref[:, off:off + TW]

    # ---- conv2: one fused bf16 matmul, f32 accumulate, bias + ReLU ----
    y = jnp.dot(w2_ref[...], col_ref[...], preferred_element_type=jnp.float32)
    y = jnp.maximum(y + b2, 0.0)

    # ---- BatchNorm1d (eval): per-channel affine in f32 ----
    out_ref[...] = scale * y + shift


def tcn_forward(x, w1_flat, w2_flat, params, *, target_lanes=2048):
    """x: (N, C, L) f32.  w1_flat/w2_flat: (Cp, K*Cp) bf16.  params: (Cp, 4) f32."""
    N, C, L = x.shape
    Cp = w1_flat.shape[0]

    slot = _round_up(L + PAD, 128)              # per-batch lane slot, 128-aligned
    left = slot - L                             # >= PAD zeros of causal padding
    # Prefer >= 2 grid steps when N >= 2 (megacore sharding on v7x) while
    # targeting ~target_lanes lanes per step for pipelining efficiency.
    # TODO(synk): per-generation tile sizing (bigger TW on v5e/v6e, Buffered(3)
    # on v5e) left as the target_lanes knob rather than auto-detected.
    spt_cap = -(-N // 2) if N >= 2 else 1
    spt = max(1, min(spt_cap, max(1, target_lanes // slot)))
    n_tiles = -(-N // spt)
    n_pad = n_tiles * spt
    tile_w = spt * slot
    total_w = n_pad * slot

    # Pack the batch into the lane axis: [left zeros | x_b] per slot (bf16).
    xp = jnp.zeros((Cp, n_pad, slot), jnp.bfloat16)
    xp = xp.at[:C, :N, left:].set(jnp.transpose(x, (1, 0, 2)).astype(jnp.bfloat16))
    xp = xp.reshape(Cp, total_w)

    # Data-vs-pad lane mask (slot-periodic, identical for every tile).
    lane = jnp.arange(tile_w, dtype=jnp.int32) % slot
    mask = (lane >= left).astype(jnp.float32).reshape(1, tile_w)

    # Explicit VMEM budget (double-buffered blocks + scratch + constants).
    blk_in = Cp * tile_w * 2                           # bf16 input block
    blk_out = Cp * tile_w * 4                          # f32 output block
    scr = Cp * (MARGIN + tile_w) * 2 + KSIZE * Cp * tile_w * 2
    consts = 2 * Cp * KSIZE * Cp * 2 + Cp * 4 * 4 + tile_w * 4
    vmem_needed = 2 * (blk_in + blk_out + consts) + scr
    vmem_limit = int(min(max(vmem_needed + (4 << 20), 16 << 20), 48 << 20))

    out_packed = pl.pallas_call(
        tcn_kernel,
        out_shape=jax.ShapeDtypeStruct((Cp, total_w), jnp.float32),
        grid_spec=pltpu.PrefetchScalarGridSpec(
            num_scalar_prefetch=0,
            grid=(n_tiles,),
            in_specs=[
                pl.BlockSpec((Cp, tile_w), lambda t: (0, t)),           # x
                pl.BlockSpec((1, tile_w), lambda t: (0, 0)),            # mask
                pl.BlockSpec((Cp, KSIZE * Cp), lambda t: (0, 0)),       # w1
                pl.BlockSpec((Cp, KSIZE * Cp), lambda t: (0, 0)),       # w2
                pl.BlockSpec((Cp, 4), lambda t: (0, 0)),                # params
            ],
            out_specs=pl.BlockSpec((Cp, tile_w), lambda t: (0, t)),
            scratch_shapes=[
                pltpu.VMEM((Cp, MARGIN + tile_w), jnp.bfloat16),        # xs
                pltpu.VMEM((KSIZE * Cp, tile_w), jnp.bfloat16),         # col
            ],
        ),
        compiler_params=pltpu.CompilerParams(
            dimension_semantics=("parallel",),
            vmem_limit_bytes=vmem_limit),
    )(xp, mask, w1_flat, w2_flat, params)

    # Drop pad channels / pad lanes / padded batch slots; return NCL layout.
    # TODO(synk): accepting/producing a channel-major layout upstream would
    # remove one of the two remaining wrapper pack/unpack HBM passes.
    out = out_packed.reshape(Cp, n_pad, slot)[:C, :N, left:]
    return jnp.transpose(out, (1, 0, 2))


def pack_weights(w1_oik, b1, w2_oik, b2, bn_scale, bn_shift):
    """Channel-pad to a multiple of 16 (bf16 sublane packing) and flatten."""
    C = w1_oik.shape[0]
    Cp = _round_up(C, 16)

    def flat(w):
        wp = jnp.zeros((Cp, Cp, KSIZE), jnp.float32).at[:C, :C, :].set(w)
        # [o, i, k] -> [o, k, i] -> (Cp, K*Cp): row o, flat index k*Cp + i,
        # matching the col scratch layout [k-block][input channel].
        return jnp.transpose(wp, (0, 2, 1)).reshape(Cp, KSIZE * Cp).astype(jnp.bfloat16)

    def padv(v):
        return jnp.zeros((Cp,), jnp.float32).at[:C].set(v)

    params = jnp.stack([padv(b1), padv(b2), padv(bn_scale), padv(bn_shift)], axis=1)
    return flat(w1_oik), flat(w2_oik), params


def make_weight_normed_conv(key, c_out, c_in, k):
    """Deterministic synthetic weight_norm(Conv1d) params -> effective weight."""
    kv, kg, kb = jax.random.split(key, 3)
    v = jax.random.normal(kv, (c_out, c_in, k), jnp.float32) * 0.01
    g = jnp.abs(jax.random.normal(kg, (c_out, 1, 1), jnp.float32)) + 0.5
    norm = jnp.sqrt(jnp.sum(v * v, axis=(1, 2), keepdims=True))
    w = g * v / norm                                    # (C_out, C_in, K)
    b = jax.random.normal(kb, (c_out,), jnp.float32) * 0.01
    return w, b


def reference_forward(x, w1_oik, b1, w2_oik, b2, bn_scale, bn_shift):
    """Pure-JAX reference mirroring the PyTorch graph (eval mode) with bf16
    rounding applied at the same points as the kernel's bf16 datapath."""
    rnd = lambda a: a.astype(jnp.bfloat16).astype(jnp.float32)
    xb, w1b, w2b = rnd(x), rnd(w1_oik), rnd(w2_oik)
    dn = jax.lax.conv_dimension_numbers(xb.shape, w1b.shape, ("NCH", "OIH", "NCH"))
    h = jax.lax.conv_general_dilated(xb, w1b, (1,), [(PAD, PAD)],
                                     rhs_dilation=(DIL,), dimension_numbers=dn,
                                     precision=jax.lax.Precision.HIGHEST)
    h = jnp.maximum(h[:, :, :-PAD] + b1[None, :, None], 0.0)   # chomp+bias+ReLU
    h = rnd(h)
    y = jax.lax.conv_general_dilated(h, w2b, (1,), [(PAD, PAD)],
                                     rhs_dilation=(DIL,), dimension_numbers=dn,
                                     precision=jax.lax.Precision.HIGHEST)
    y = jnp.maximum(y[:, :, :-PAD] + b2[None, :, None], 0.0)
    return bn_scale[None, :, None] * y + bn_shift[None, :, None]


if __name__ == "__main__":
    key = jax.random.PRNGKey(0)
    kx, k1, k2 = jax.random.split(key, 3)

    N, C, L = 2, 4, 64                      # batch, in_channel, sequence length
    x = jax.random.normal(kx, (N, C, L), jnp.float32)

    # TemporalBlock(in_channel, in_channel, kernel_size=6, dilation=9, padding=45)
    w1_oik, b1 = make_weight_normed_conv(k1, C, C, KSIZE)   # (C, C, K)
    w2_oik, b2 = make_weight_normed_conv(k2, C, C, KSIZE)

    # BatchNorm1d(in_channel), eval mode with PyTorch defaults:
    # gamma=1, beta=0, running_mean=0, running_var=1, eps=1e-5
    gamma = jnp.ones((C,), jnp.float32)
    beta = jnp.zeros((C,), jnp.float32)
    running_mean = jnp.zeros((C,), jnp.float32)
    running_var = jnp.ones((C,), jnp.float32)
    eps = 1e-5
    bn_scale = gamma / jnp.sqrt(running_var + eps)
    bn_shift = beta - running_mean * bn_scale

    w1_flat, w2_flat, params = pack_weights(w1_oik, b1, w2_oik, b2,
                                            bn_scale, bn_shift)

    fwd = jax.jit(tcn_forward)
    out = jax.block_until_ready(fwd(x, w1_flat, w2_flat, params))

    ref = jax.block_until_ready(
        reference_forward(x, w1_oik, b1, w2_oik, b2, bn_scale, bn_shift))

    assert out.shape == (N, C, L)
    err = jnp.max(jnp.abs(out - ref))
    assert jnp.allclose(out, ref, atol=5e-3, rtol=5e-3), f"max abs err {err}"

    print("KERNEL_OK")
</pallas_src>

<mosaic_0001>
module attributes {stable_mosaic.version = 11 : i64} {
  func.func @tcn_kernel(%arg0: i32, %arg1: memref<16x128xbf16, #tpu.memory_space<vmem>>, %arg2: memref<1x128xf32, #tpu.memory_space<vmem>>, %arg3: memref<16x96xbf16, #tpu.memory_space<vmem>>, %arg4: memref<16x96xbf16, #tpu.memory_space<vmem>>, %arg5: memref<16x4xf32, #tpu.memory_space<vmem>>, %arg6: memref<16x128xf32, #tpu.memory_space<vmem>>, %arg7: memref<16x256xbf16, #tpu.memory_space<vmem>>, %arg8: memref<96x128xbf16, #tpu.memory_space<vmem>>) attributes {dimension_semantics = [#tpu.dimension_semantics<parallel>], iteration_bounds = array<i64: 2>, scalar_prefetch = 0 : i64, scratch_operands = 2 : i64, tpu.core_type = #tpu.core_type<tc>, window_params = [{transform_indices = @transform_0, window_bounds = array<i64: 16, 128>}, {pipeline_mode = #tpu.pipeline_mode<synchronous>, transform_indices = @transform_1, window_bounds = array<i64: 1, 128>}, {pipeline_mode = #tpu.pipeline_mode<synchronous>, transform_indices = @transform_2, window_bounds = array<i64: 16, 96>}, {pipeline_mode = #tpu.pipeline_mode<synchronous>, transform_indices = @transform_3, window_bounds = array<i64: 16, 96>}, {pipeline_mode = #tpu.pipeline_mode<synchronous>, transform_indices = @transform_4, window_bounds = array<i64: 16, 4>}, {transform_indices = @transform_5, window_bounds = array<i64: 16, 128>}]} {
    %c0 = arith.constant 0 : index
    %c0_0 = arith.constant 0 : index
    %0 = vector.load %arg5[%c0, %c0_0] : memref<16x4xf32, #tpu.memory_space<vmem>>, vector<16x1xf32>
    %c0_1 = arith.constant 0 : index
    %c1 = arith.constant 1 : index
    %1 = vector.load %arg5[%c0_1, %c1] : memref<16x4xf32, #tpu.memory_space<vmem>>, vector<16x1xf32>
    %c0_2 = arith.constant 0 : index
    %c2 = arith.constant 2 : index
    %2 = vector.load %arg5[%c0_2, %c2] : memref<16x4xf32, #tpu.memory_space<vmem>>, vector<16x1xf32>
    %c0_3 = arith.constant 0 : index
    %c3 = arith.constant 3 : index
    %3 = vector.load %arg5[%c0_3, %c3] : memref<16x4xf32, #tpu.memory_space<vmem>>, vector<16x1xf32>
    %c0_4 = arith.constant 0 : index
    %c0_5 = arith.constant 0 : index
    %4 = vector.load %arg2[%c0_4, %c0_5] : memref<1x128xf32, #tpu.memory_space<vmem>>, vector<1x128xf32>
    %cst = arith.constant 0.000000e+00 : bf16
    %5 = vector.broadcast %cst : bf16 to vector<16x128xbf16>
    %c0_6 = arith.constant 0 : index
    %c0_7 = arith.constant 0 : index
    %6 = vector.load %arg7[%c0_6, %c0_7] : memref<16x256xbf16, #tpu.memory_space<vmem>>, vector<16x128xbf16>
    tpu.vector_store %arg7[%c0_6, %c0_7], %5 {strides = array<i32>} : memref<16x256xbf16, #tpu.memory_space<vmem>>, vector<16x128xbf16>,
    %c0_8 = arith.constant 0 : index
    %c0_9 = arith.constant 0 : index
    %7 = vector.load %arg1[%c0_8, %c0_9] : memref<16x128xbf16, #tpu.memory_space<vmem>>, vector<16x128xbf16>
    %c0_10 = arith.constant 0 : index
    %c128 = arith.constant 128 : index
    %8 = vector.load %arg7[%c0_10, %c128] : memref<16x256xbf16, #tpu.memory_space<vmem>>, vector<16x128xbf16>
    tpu.vector_store %arg7[%c0_10, %c128], %7 {strides = array<i32>} : memref<16x256xbf16, #tpu.memory_space<vmem>>, vector<16x128xbf16>,
    %c0_11 = arith.constant 0 : index
    %c83 = arith.constant 83 : index
    %9 = vector.load %arg7[%c0_11, %c83] : memref<16x256xbf16, #tpu.memory_space<vmem>>, vector<16x128xbf16>
    %c0_12 = arith.constant 0 : index
    %c0_13 = arith.constant 0 : index
    %10 = vector.load %arg8[%c0_12, %c0_13] : memref<96x128xbf16, #tpu.memory_space<vmem>>, vector<16x128xbf16>
    tpu.vector_store %arg8[%c0_12, %c0_13], %9 {strides = array<i32>} : memref<96x128xbf16, #tpu.memory_space<vmem>>, vector<16x128xbf16>,
    %c0_14 = arith.constant 0 : index
    %c92 = arith.constant 92 : index
    %11 = vector.load %arg7[%c0_14, %c92] : memref<16x256xbf16, #tpu.memory_space<vmem>>, vector<16x128xbf16>
    %c16 = arith.constant 16 : index
    %c0_15 = arith.constant 0 : index
    %12 = vector.load %arg8[%c16, %c0_15] : memref<96x128xbf16, #tpu.memory_space<vmem>>, vector<16x128xbf16>
    tpu.vector_store %arg8[%c16, %c0_15], %11 {strides = array<i32>} : memref<96x128xbf16, #tpu.memory_space<vmem>>, vector<16x128xbf16>,
    %c0_16 = arith.constant 0 : index
    %c101 = arith.constant 101 : index
    %13 = vector.load %arg7[%c0_16, %c101] : memref<16x256xbf16, #tpu.memory_space<vmem>>, vector<16x128xbf16>
    %c32 = arith.constant 32 : index
    %c0_17 = arith.constant 0 : index
    %14 = vector.load %arg8[%c32, %c0_17] : memref<96x128xbf16, #tpu.memory_space<vmem>>, vector<16x128xbf16>
    tpu.vector_store %arg8[%c32, %c0_17], %13 {strides = array<i32>} : memref<96x128xbf16, #tpu.memory_space<vmem>>, vector<16x128xbf16>,
    %c0_18 = arith.constant 0 : index
    %c110 = arith.constant 110 : index
    %15 = vector.load %arg7[%c0_18, %c110] : memref<16x256xbf16, #tpu.memory_space<vmem>>, vector<16x128xbf16>
    %c48 = arith.constant 48 : index
    %c0_19 = arith.constant 0 : index
    %16 = vector.load %arg8[%c48, %c0_19] : memref<96x128xbf16, #tpu.memory_space<vmem>>, vector<16x128xbf16>
    tpu.vector_store %arg8[%c48, %c0_19], %15 {strides = array<i32>} : memref<96x128xbf16, #tpu.memory_space<vmem>>, vector<16x128xbf16>,
    %c0_20 = arith.constant 0 : index
    %c119 = arith.constant 119 : index
    %17 = vector.load %arg7[%c0_20, %c119] : memref<16x256xbf16, #tpu.memory_space<vmem>>, vector<16x128xbf16>
    %c64 = arith.constant 64 : index
    %c0_21 = arith.constant 0 : index
    %18 = vector.load %arg8[%c64, %c0_21] : memref<96x128xbf16, #tpu.memory_space<vmem>>, vector<16x128xbf16>
    tpu.vector_store %arg8[%c64, %c0_21], %17 {strides = array<i32>} : memref<96x128xbf16, #tpu.memory_space<vmem>>, vector<16x128xbf16>,
    %c0_22 = arith.constant 0 : index
    %c128_23 = arith.constant 128 : index
    %19 = vector.load %arg7[%c0_22, %c128_23] : memref<16x256xbf16, #tpu.memory_space<vmem>>, vector<16x128xbf16>
    %c80 = arith.constant 80 : index
    %c0_24 = arith.constant 0 : index
    %20 = vector.load %arg8[%c80, %c0_24] : memref<96x128xbf16, #tpu.memory_space<vmem>>, vector<16x128xbf16>
    tpu.vector_store %arg8[%c80, %c0_24], %19 {strides = array<i32>} : memref<96x128xbf16, #tpu.memory_space<vmem>>, vector<16x128xbf16>,
    %c0_25 = arith.constant 0 : index
    %c0_26 = arith.constant 0 : index
    %21 = vector.load %arg3[%c0_25, %c0_26] : memref<16x96xbf16, #tpu.memory_space<vmem>>, vector<16x96xbf16>
    %c0_27 = arith.constant 0 : index
    %c0_28 = arith.constant 0 : index
    %22 = vector.load %arg8[%c0_27, %c0_28] : memref<96x128xbf16, #tpu.memory_space<vmem>>, vector<96x128xbf16>
    %cst_29 = arith.constant dense<0.000000e+00> : vector<16x128xf32>
    %23 = tpu.matmul %21, %22, %cst_29 {dimension_numbers = #tpu.dot_dimension_numbers<[1], [0], [0], [1], [0, 0, 1, 1], [], []>} : vector<16x96xbf16>, vector<96x128xbf16>, vector<16x128xf32> -> vector<16x128xf32>
    %24 = vector.broadcast %0 : vector<16x1xf32> to vector<16x128xf32>
    %25 = arith.addf %23, %24 : vector<16x128xf32>
    %cst_30 = arith.constant 0.000000e+00 : f32
    %26 = vector.broadcast %cst_30 : f32 to vector<16x128xf32>
    %27 = arith.maximumf %25, %26 : vector<16x128xf32>
    %28 = vector.broadcast %4 : vector<1x128xf32> to vector<16x128xf32>
    %29 = arith.mulf %27, %28 : vector<16x128xf32>
    %30 = arith.truncf %29 : vector<16x128xf32> to vector<16x128xbf16>
    %c0_31 = arith.constant 0 : index
    %c128_32 = arith.constant 128 : index
    %31 = vector.load %arg7[%c0_31, %c128_32] : memref<16x256xbf16, #tpu.memory_space<vmem>>, vector<16x128xbf16>
    tpu.vector_store %arg7[%c0_31, %c128_32], %30 {strides = array<i32>} : memref<16x256xbf16, #tpu.memory_space<vmem>>, vector<16x128xbf16>,
    %c0_33 = arith.constant 0 : index
    %c83_34 = arith.constant 83 : index
    %32 = vector.load %arg7[%c0_33, %c83_34] : memref<16x256xbf16, #tpu.memory_space<vmem>>, vector<16x128xbf16>
    %c0_35 = arith.constant 0 : index
    %c0_36 = arith.constant 0 : index
    %33 = vector.load %arg8[%c0_35, %c0_36] : memref<96x128xbf16, #tpu.memory_space<vmem>>, vector<16x128xbf16>
    tpu.vector_store %arg8[%c0_35, %c0_36], %32 {strides = array<i32>} : memref<96x128xbf16, #tpu.memory_space<vmem>>, vector<16x128xbf16>,
    %c0_37 = arith.constant 0 : index
    %c92_38 = arith.constant 92 : index
    %34 = vector.load %arg7[%c0_37, %c92_38] : memref<16x256xbf16, #tpu.memory_space<vmem>>, vector<16x128xbf16>
    %c16_39 = arith.constant 16 : index
    %c0_40 = arith.constant 0 : index
    %35 = vector.load %arg8[%c16_39, %c0_40] : memref<96x128xbf16, #tpu.memory_space<vmem>>, vector<16x128xbf16>
    tpu.vector_store %arg8[%c16_39, %c0_40], %34 {strides = array<i32>} : memref<96x128xbf16, #tpu.memory_space<vmem>>, vector<16x128xbf16>,
    %c0_41 = arith.constant 0 : index
    %c101_42 = arith.constant 101 : index
    %36 = vector.load %arg7[%c0_41, %c101_42] : memref<16x256xbf16, #tpu.memory_space<vmem>>, vector<16x128xbf16>
    %c32_43 = arith.constant 32 : index
    %c0_44 = arith.constant 0 : index
    %37 = vector.load %arg8[%c32_43, %c0_44] : memref<96x128xbf16, #tpu.memory_space<vmem>>, vector<16x128xbf16>
    tpu.vector_store %arg8[%c32_43, %c0_44], %36 {strides = array<i32>} : memref<96x128xbf16, #tpu.memory_space<vmem>>, vector<16x128xbf16>,
    %c0_45 = arith.constant 0 : index
    %c110_46 = arith.constant 110 : index
    %38 = vector.load %arg7[%c0_45, %c110_46] : memref<16x256xbf16, #tpu.memory_space<vmem>>, vector<16x128xbf16>
    %c48_47 = arith.constant 48 : index
    %c0_48 = arith.constant 0 : index
    %39 = vector.load %arg8[%c48_47, %c0_48] : memref<96x128xbf16, #tpu.memory_space<vmem>>, vector<16x128xbf16>
    tpu.vector_store %arg8[%c48_47, %c0_48], %38 {strides = array<i32>} : memref<96x128xbf16, #tpu.memory_space<vmem>>, vector<16x128xbf16>,
    %c0_49 = arith.constant 0 : index
    %c119_50 = arith.constant 119 : index
    %40 = vector.load %arg7[%c0_49, %c119_50] : memref<16x256xbf16, #tpu.memory_space<vmem>>, vector<16x128xbf16>
    %c64_51 = arith.constant 64 : index
    %c0_52 = arith.constant 0 : index
    %41 = vector.load %arg8[%c64_51, %c0_52] : memref<96x128xbf16, #tpu.memory_space<vmem>>, vector<16x128xbf16>
    tpu.vector_store %arg8[%c64_51, %c0_52], %40 {strides = array<i32>} : memref<96x128xbf16, #tpu.memory_space<vmem>>, vector<16x128xbf16>,
    %c0_53 = arith.constant 0 : index
    %c128_54 = arith.constant 128 : index
    %42 = vector.load %arg7[%c0_53, %c128_54] : memref<16x256xbf16, #tpu.memory_space<vmem>>, vector<16x128xbf16>
    %c80_55 = arith.constant 80 : index
    %c0_56 = arith.constant 0 : index
    %43 = vector.load %arg8[%c80_55, %c0_56] : memref<96x128xbf16, #tpu.memory_space<vmem>>, vector<16x128xbf16>
    tpu.vector_store %arg8[%c80_55, %c0_56], %42 {strides = array<i32>} : memref<96x128xbf16, #tpu.memory_space<vmem>>, vector<16x128xbf16>,
    %c0_57 = arith.constant 0 : index
    %c0_58 = arith.constant 0 : index
    %44 = vector.load %arg4[%c0_57, %c0_58] : memref<16x96xbf16, #tpu.memory_space<vmem>>, vector<16x96xbf16>
    %c0_59 = arith.constant 0 : index
    %c0_60 = arith.constant 0 : index
    %45 = vector.load %arg8[%c0_59, %c0_60] : memref<96x128xbf16, #tpu.memory_space<vmem>>, vector<96x128xbf16>
    %cst_61 = arith.constant dense<0.000000e+00> : vector<16x128xf32>
    %46 = tpu.matmul %44, %45, %cst_61 {dimension_numbers = #tpu.dot_dimension_numbers<[1], [0], [0], [1], [0, 0, 1, 1], [], []>} : vector<16x96xbf16>, vector<96x128xbf16>, vector<16x128xf32> -> vector<16x128xf32>
    %47 = vector.broadcast %1 : vector<16x1xf32> to vector<16x128xf32>
    %48 = arith.addf %46, %47 : vector<16x128xf32>
    %cst_62 = arith.constant 0.000000e+00 : f32
    %49 = vector.broadcast %cst_62 : f32 to vector<16x128xf32>
    %50 = arith.maximumf %48, %49 : vector<16x128xf32>
    %51 = vector.broadcast %2 : vector<16x1xf32> to vector<16x128xf32>
    %52 = arith.mulf %51, %50 : vector<16x128xf32>
    %53 = vector.broadcast %3 : vector<16x1xf32> to vector<16x128xf32>
    %54 = arith.addf %52, %53 : vector<16x128xf32>
    %c0_63 = arith.constant 0 : index
    %c0_64 = arith.constant 0 : index
    %55 = vector.load %arg6[%c0_63, %c0_64] : memref<16x128xf32, #tpu.memory_space<vmem>>, vector<16x128xf32>
    tpu.vector_store %arg6[%c0_63, %c0_64], %54 {strides = array<i32>} : memref<16x128xf32, #tpu.memory_space<vmem>>, vector<16x128xf32>,
    return
  }
  func.func @transform_0(%arg0: i32) -> (i32, i32) {
    %c0_i32 = arith.constant 0 : i32
    %c0_i32_0 = arith.constant 0 : i32
    return %c0_i32, %arg0 : i32, i32
  }
  func.func @transform_1(%arg0: i32) -> (i32, i32) {
    %c0_i32 = arith.constant 0 : i32
    %c0_i32_0 = arith.constant 0 : i32
    %c0_i32_1 = arith.constant 0 : i32
    return %c0_i32, %c0_i32_0 : i32, i32
  }
  func.func @transform_2(%arg0: i32) -> (i32, i32) {
    %c0_i32 = arith.constant 0 : i32
    %c0_i32_0 = arith.constant 0 : i32
    %c0_i32_1 = arith.constant 0 : i32
    return %c0_i32, %c0_i32_0 : i32, i32
  }
  func.func @transform_3(%arg0: i32) -> (i32, i32) {
    %c0_i32 = arith.constant 0 : i32
    %c0_i32_0 = arith.constant 0 : i32
    %c0_i32_1 = arith.constant 0 : i32
    return %c0_i32, %c0_i32_0 : i32, i32
  }
  func.func @transform_4(%arg0: i32) -> (i32, i32) {
    %c0_i32 = arith.constant 0 : i32
    %c0_i32_0 = arith.constant 0 : i32
    %c0_i32_1 = arith.constant 0 : i32
    return %c0_i32, %c0_i32_0 : i32, i32
  }
  func.func @transform_5(%arg0: i32) -> (i32, i32) {
    %c0_i32 = arith.constant 0 : i32
    %c0_i32_0 = arith.constant 0 : i32
    return %c0_i32, %arg0 : i32, i32
  }
}

</mosaic_0001>

<bundles_post_ra>
// kernel: tcn_forward.1
= control target key start
LH: loop header
LB: loop body
LE: loop exit
PB: predicated region body
PF: predicated region fallthrough
CT: control target
= control target key end

     0   :  { %s1013_s18 = smov 0   ;;  %s1015_s19 = smov 0   ;;  %s1160_s0 = inlined_call_operand.vmem [shape: bf16[16,256], index: 0, kind: input, shape index: {}]   ;;  %s1161_s1 = inlined_call_operand.vmem [shape: f32[1,128], index: 1, kind: input, shape index: {}]   ;;  %s1162_s2 = inlined_call_operand.vmem [shape: bf16[16,96], index: 2, kind: input, shape index: {}]   ;;  %s1163_s3 = inlined_call_operand.vmem [shape: bf16[16,96], index: 3, kind: input, shape index: {}]   ;;  %s1164_s4 = inlined_call_operand.vmem [shape: f32[16,4], index: 4, kind: input, shape index: {}]   ;;  %s1165_s5 = inlined_call_operand.vmem [shape: f32[16,256], index: 5, kind: output, shape index: {}]  }
   0x1   :  { %s1017_s20 = smov 0  }
   0x2 LB: > { %s812_s21 = sadd.s32 4294967295, %s970_s20   ;;  %s1030_s22 = sadd.s32 1, %s970_s20   ;;  %s970_s20 = sphi %s1017_s20, %s1169_s20   ;;  %s966_s19 = sphi %s1015_s19, %s1168_s19   ;;  %s962_s18 = sphi %s1013_s18, %s1167_s18  }
   0x3   : > { %s19_s23 = ssub.s32 %s970_s20, %s1030_s22  ;;  %s22_s24 = sadd.s32 1, %s966_s19 }
   0x4   : > { %p20_p0 = scmp.eq.s32.totalorder %s19_s23, 0  ;;  %p29_p1 = scmp.ne.s32.totalorder %s966_s19, %s962_s18 }
   0x5   : > { %p30_p2 = scmp.eq.s32.totalorder %s970_s20, 0  ;;  %p143_p3 = scmp.eq.s32.totalorder %s812_s21, 1 }
   0x6   : > { %s1041_s25 = scalar_select %p20_p0, %s966_s19, %s22_s24  }
   0x7   : > { %p31_p4 = por %p30_p2, %p29_p1  ;;  %p1043_p5 = por %p143_p3, %p29_p1 }
   0x8   : > { %p815_p6 = scmp.ge.s32.totalorder %s970_s20, 2 }
   0xa   : > { %177 = sbr.rel (%p815_p6) target bundleno = 20 (0x14), region = 32 }
   0xf   : > { %180 = sbr.rel (!%p31_p4) target bundleno = 20 (0x14), region = 36  ;;  %s182_s27 = sand.u32 (%p31_p4), 1, %s966_s19  }
  0x10   : > { %s817_s28 = sshll.u32 (%p31_p4), %s970_s20, 2  ;;  %s816_s29 = sshll.u32 (%p31_p4), %s182_s27, 3 }
  0x11   : > { %s186_s7 = scalar_lea.vmem (%p31_p4), %s1160_s0, %s817_s28  ;;  %s184_s8 = scalar_lea.vmem (%p31_p4), [#allocation4], %s816_s29 }
  0x12   : > { %v203_v0 = vld [vmem:[%s186_s7] sm:$0xf] (%p31_p4)  ;;  %v205_v1 = vld [vmem:[%s186_s7 + $0x8] sm:$0xf] (%p31_p4) }
  0x13   : > { %204 = vst [vmem:[%s184_s8] sm:$0xf] (%p31_p4), %v203_v0  ;;  %206 = vst [vmem:[%s184_s8 + $0x4] sm:$0xf] (%p31_p4), %v205_v1 }
  0x14 PF: > { %p818_p7 = scmp.ge.s32.totalorder %s970_s20, 1  ;;  %p233_p8 = scmp.lt.s32.totalorder %s970_s20, 3 }
  0x16   : > { %p234_p9 = pnand %p818_p7, %p233_p8 }
  0x17   : > { %s240_s9 = sand.u32 (!%p234_p9), 1, %s962_s18   ;;  %s974_s12 = smov (!%p234_p9), 9  }
  0x18   : > { %237 = sbr.rel (%p234_p9) target bundleno = 760 (0x2f8), region = 77  ;;  %s819_s10 = sshll.u32 (!%p234_p9), %s240_s9, 3 }
  0x19   : > { %s242_s11 = scalar_lea.vmem (!%p234_p9), [#allocation4], %s819_s10  ;;  %s975_s13 = smov (!%p234_p9), 18  }
  0x1a   : > { %s976_s14 = smov (!%p234_p9), 27   ;;  %s977_s15 = smov (!%p234_p9), 36  }
  0x1b   : > { %s978_s16 = smov (!%p234_p9), 45   ;;  %s820_s10 = sshll.u32 (!%p234_p9), %s240_s9, 4 }
  0x1d   : > { %v972_v2 = vmov 0   ;;  %v272_v3 = vld [vmem:[%s242_s11] sm:$0xf]  ;;  %v273_v4 = vld [vmem:[%s242_s11 + $0x4] sm:$0xf]  ;;  %v973_v5 = vmov 0.0  }
  0x1e   : > { %270 = vst [vmem:[#allocation2] sm:$0xf] %v972_v2  ;;  %271 = vst [vmem:[#allocation2 + $0x8] sm:$0xf] %v972_v2  ;;  %927 = vset.pattern.permute.xlu0 %v972_v2  ;;  %928 = vset.pattern.permute.xlu1 %v972_v2  ;;  %vm979_vm0 = vmmov 0   ;;  %v1076_v11 = vld [vmem:[%s1164_s4] sm:$0xff] }
  0x1f   : > { %274 = vst [vmem:[#allocation2 + $0x4] sm:$0xf] %v272_v3  ;;  %275 = vst [vmem:[#allocation2 + $0xc] sm:$0xf] %v273_v4  ;;  %860 = vmatprep.subr.bf16.mxu0 %v973_v5  ;;  %876 = vmatprep.subr.bf16.mxu1 %v973_v5  ;;  %v1081_v12 = vld [vmem:[%s1164_s4 + $0x8] sm:$0xff]  ;;  %vm354_vm1 = vcmask 72704  }
  0x20   : > { %872 = vmatprep.mubr.msk.bf16.mxu0 %vm979_vm0, %v973_v5  ;;  %888 = vmatprep.mubr.msk.bf16.mxu1 %vm979_vm0, %v973_v5  ;;  %vm337_vm2 = vcmask 146432   ;;  %vm320_vm3 = vcmask 220160   ;;  %vm303_vm4 = vcmask 293888   ;;  %vm286_vm5 = vcmask 367616   ;;  %v940_v48 = vld [vmem:[%s1162_s2] sm:$0xff]   ;;  %s265_s11 = scalar_lea.vmem [#allocation5], %s820_s10 }
  0x21   : > { %vm430_vm6 = vcmask 785408   ;;  %v829_v52 = vld [vmem:[%s1161_s1] ss:$0 sm:$0xff]  ;;  %s841_s18 = sshll.u32 (%p1043_p5), %s812_s21, 3 }
  0x26   : > { %v344_v6 = vld [vmem:[#allocation2] sm:$0xff]  ;;  %v362_v8 = vld [vmem:[#allocation2 + $0xc] sm:$0xf] }
  0x27   : > { %v361_v7 = vld [vmem:[#allocation2 + $0x4] sm:$0xf]  ;;  %348 = vrot.lane.b32.xlu0 %v344_v6, %s974_s12  ;;  %331 = vrot.lane.b32.xlu1 %v344_v6, %s975_s13  ;;  %v345_v9 = vld [vmem:[#allocation2 + $0x8] sm:$0xff]  ;;  %364 = vst [vmem:[#allocation3 + $0x2c] sm:$0xf] %v362_v8  ;;  %v982_v8 = vmov 3  }
  0x28   : > { %363 = vst [vmem:[#allocation3 + $0x28] sm:$0xf] %v361_v7  ;;  %v981_v7 = vmov 2  }
  0x2b   : > { %350 = vrot.lane.b32.xlu0 %v345_v9, %s974_s12  ;;  %333 = vrot.lane.b32.xlu1 %v345_v9, %s975_s13 }
  0x2f   : > { %316 = vrot.lane.b32.xlu1 %v345_v9, %s976_s14  ;;  %314 = vrot.lane.b32.xlu0 %v344_v6, %s976_s14  ;;  %v934_v10 = vld [vmem:[#allocation3 + $0x28] sm:$0xff]  }
  0x30   : > { %861 = vmatpush3.bf16.msra.mxu0 %v934_v10 }
  0x31   : > { %862 = vmatprep.subr.bf16.mxu0 %v973_v5 }
  0x33   : > { %299 = vrot.lane.b32.xlu1 %v345_v9, %s977_s15  ;;  %297 = vrot.lane.b32.xlu0 %v344_v6, %s977_s15 }
  0x37   : > { %282 = vrot.lane.b32.xlu1 %v345_v9, %s978_s16  ;;  %280 = vrot.lane.b32.xlu0 %v344_v6, %s978_s16  ;;  %v980_v6 = vmov 1  }
  0x3b   : > { %381 = vperm.xlu0 %927, %v1076_v11   ;;  %386 = vperm.xlu1 %928, %v1081_v12  }
  0x3f   : > { %929 = vset.pattern.permute.xlu1 %v980_v6  ;;  %930 = vset.pattern.permute.xlu0 %v980_v6 }
  0x99   : > { %v349_v13 = vpop.permute.xlu0 %348  ;;  %v332_v14 = vpop.permute.xlu1 %331 }
  0x9a   : > { %v352_v15 = vrot.slane %v349_v13, 4  ;;  %v335_v16 = vrot.slane %v332_v14, 4 }
  0x9c   : > { %v355_v17 = vsel %vm354_vm1, %v349_v13, %v352_v15  ;;  %v338_v18 = vsel %vm337_vm2, %v332_v14, %v335_v16 }
  0x9d   : > { %359 = vst [vmem:[#allocation3 + $0x20] sm:$0xf] %v355_v17  ;;  %342 = vst [vmem:[#allocation3 + $0x18] sm:$0xf] %v338_v18  ;;  %v351_v19 = vpop.permute.xlu0 %350  ;;  %v334_v20 = vpop.permute.xlu1 %333 }
  0x9e   : > { %v353_v21 = vrot.slane %v351_v19, 4  ;;  %v336_v22 = vrot.slane %v334_v20, 4 }
  0xa0   : > { %v356_v23 = vsel %vm354_vm1, %v351_v19, %v353_v21  ;;  %v339_v24 = vsel %vm337_vm2, %v334_v20, %v336_v22 }
  0xa1   : > { %360 = vst [vmem:[#allocation3 + $0x24] sm:$0xf] %v356_v23  ;;  %343 = vst [vmem:[#allocation3 + $0x1c] sm:$0xf] %v339_v24  ;;  %v317_v25 = vpop.permute.xlu1 %316  ;;  %v315_v26 = vpop.permute.xlu0 %314 }
  0xa2   : > { %v319_v27 = vrot.slane %v317_v25, 4  ;;  %v318_v28 = vrot.slane %v315_v26, 4 }
  0xa4   : > { %v322_v29 = vsel %vm320_vm3, %v317_v25, %v319_v27  ;;  %v321_v30 = vsel %vm320_vm3, %v315_v26, %v318_v28 }
  0xa5   : > { %326 = vst [vmem:[#allocation3 + $0x14] sm:$0xf] %v322_v29  ;;  %325 = vst [vmem:[#allocation3 + $0x10] sm:$0xf] %v321_v30  ;;  %v300_v31 = vpop.permute.xlu1 %299  ;;  %v298_v32 = vpop.permute.xlu0 %297 }
  0xa6   : > { %v302_v33 = vrot.slane %v300_v31, 4  ;;  %v301_v34 = vrot.slane %v298_v32, 4 }
  0xa8   : > { %v305_v35 = vsel %vm303_vm4, %v300_v31, %v302_v33  ;;  %v304_v36 = vsel %vm303_vm4, %v298_v32, %v301_v34  ;;  %v935_v37 = vld [vmem:[#allocation3 + $0x20] sm:$0xff]   ;;  %v936_v44 = vld [vmem:[#allocation3 + $0x18] sm:$0xff]  }
  0xa9   : > { %309 = vst [vmem:[#allocation3 + $0xc] sm:$0xf] %v305_v35  ;;  %308 = vst [vmem:[#allocation3 + $0x8] sm:$0xf] %v304_v36  ;;  %v283_v38 = vpop.permute.xlu1 %282  ;;  %v281_v39 = vpop.permute.xlu0 %280  ;;  %863 = vmatpush3.bf16.msra.mxu0 %v935_v37 }
  0xaa   : > { %v285_v40 = vrot.slane %v283_v38, 4  ;;  %v284_v41 = vrot.slane %v281_v39, 4  ;;  %864 = vmatprep.subr.bf16.mxu0 %v973_v5 }
  0xac   : > { %v288_v42 = vsel %vm286_vm5, %v283_v38, %v285_v40  ;;  %v287_v43 = vsel %vm286_vm5, %v281_v39, %v284_v41  ;;  %v937_v45 = vld [vmem:[#allocation3 + $0x10] sm:$0xff]  }
  0xad   : > { %292 = vst [vmem:[#allocation3 + $0x4] sm:$0xf] %v288_v42  ;;  %291 = vst [vmem:[#allocation3] sm:$0xf] %v287_v43  ;;  %865 = vmatpush3.bf16.msra.mxu0 %v936_v44  ;;  %v947_v44 = vld [vmem:[%s1163_s3] sm:$0xff]  }
  0xae   : > { %866 = vmatprep.subr.bf16.mxu0 %v973_v5 }
  0xb0   : > { %v938_v46 = vld [vmem:[#allocation3 + $0x8] sm:$0xff]  }
  0xb1   : > { %867 = vmatpush3.bf16.msra.mxu0 %v937_v45 }
  0xb2   : > { %868 = vmatprep.subr.bf16.mxu0 %v973_v5 }
  0xb4   : > { %v939_v47 = vld [vmem:[#allocation3] sm:$0xff]  }
  0xb5   : > { %869 = vmatpush3.bf16.msra.mxu0 %v938_v46 }
  0xb6   : > { %870 = vmatprep.subr.bf16.mxu0 %v973_v5  ;;  %v382_v49 = vpop.permute.xlu0 %381  ;;  %v387_v54 = vpop.permute.xlu1 %386 }
  0xb9   : > { %871 = vmatpush3.bf16.msra.mxu0 %v939_v47 }
  0xbc   : > { %873 = vmatmul.mubr.msk.bf16.vlgmr.msra.gmra.mxu0 %vm430_vm6, %v940_v48 }
 0x17c   : > { %v468_v50 = vpop.f32.mrf.mxu0 }
 0x17d   : > { %v469_v51 = vadd.f32 %v468_v50, %v382_v49 }
 0x17e   : > { %v874_v53 = vpop.f32.mrf.mxu0 }
 0x17f   : > { %v475_v55 = vmax.f32 %v469_v51, 0.0 }
 0x180   : > { %v471_v56 = vpop.f32.mrf.mxu0 }
 0x181   : > { %v483_v57 = vmul.f32 %v829_v52, %v475_v55  ;;  %v472_v58 = vadd.f32 %v471_v56, %v387_v54 }
 0x182   : > { %v875_v59 = vpop.f32.mrf.mxu0 }
 0x183   : > { %v844_v60 = vpack.c.bf16 %v483_v57, %v483_v57  ;;  %v476_v61 = vmax.f32 %v472_v58, 0.0 }
 0x185   : > { %493 = vst [vmem:[#allocation2 + $0x4] sm:$0xf] %v844_v60  ;;  %v484_v62 = vmul.f32 %v829_v52, %v476_v61 }
 0x187   : > { %v845_v63 = vpack.c.bf16 %v484_v62, %v484_v62 }
 0x189   : > { %494 = vst [vmem:[#allocation2 + $0xc] sm:$0xf] %v845_v63 }
 0x18c   : > { %v559_v0 = vld [vmem:[#allocation2] sm:$0xff] }
 0x18d   : > { %v575_v1 = vld [vmem:[#allocation2 + $0x4] sm:$0xf]  ;;  %563 = vrot.lane.b32.xlu1 %v559_v0, %s974_s12 }
 0x18e   : > { %577 = vst [vmem:[#allocation3 + $0x28] sm:$0xf] %v575_v1 }
 0x190   : > { %v560_v2 = vld [vmem:[#allocation2 + $0x8] sm:$0xff] }
 0x191   : > { %v576_v3 = vld [vmem:[#allocation2 + $0xc] sm:$0xf]  ;;  %565 = vrot.lane.b32.xlu0 %v560_v2, %s974_s12  ;;  %547 = vrot.lane.b32.xlu1 %v559_v0, %s975_s13 }
 0x192   : > { %578 = vst [vmem:[#allocation3 + $0x2c] sm:$0xf] %v576_v3 }
 0x195   : > { %549 = vrot.lane.b32.xlu0 %v560_v2, %s975_s13  ;;  %531 = vrot.lane.b32.xlu1 %v559_v0, %s976_s14  ;;  %s718_s13 = scalar_lea.vmem (%p1043_p5), %s1165_s5, %s841_s18 }
 0x199   : > { %v941_v4 = vld [vmem:[#allocation3 + $0x28] sm:$0xff]   ;;  %533 = vrot.lane.b32.xlu0 %v560_v2, %s976_s14  ;;  %515 = vrot.lane.b32.xlu1 %v559_v0, %s977_s15 }
 0x19a   : > { %877 = vmatpush3.bf16.msra.mxu1 %v941_v4 }
 0x19b   : > { %878 = vmatprep.subr.bf16.mxu1 %v973_v5 }
 0x19d   : > { %517 = vrot.lane.b32.xlu0 %v560_v2, %s977_s15  ;;  %499 = vrot.lane.b32.xlu1 %v559_v0, %s978_s16 }
 0x1a1   : > { %501 = vrot.lane.b32.xlu0 %v560_v2, %s978_s16  ;;  %594 = vperm.xlu1 %929, %v1076_v11  }
 0x1a5   : > { %598 = vperm.xlu0 %930, %v1081_v12   ;;  %931 = vset.pattern.permute.xlu1 %v981_v7 }
 0x1a6   : > { %689 = vperm.xlu1 %931, %v1076_v11  }
 0x1a9   : > { %932 = vset.pattern.permute.xlu0 %v982_v8 }
 0x1aa   : > { %699 = vperm.xlu0 %932, %v1076_v11   ;;  %693 = vperm.xlu1 %931, %v1081_v12  }
 0x1ae   : > { %933 = vset.pattern.permute.xlu1 %v982_v8 }
 0x1af   : > { %703 = vperm.xlu1 %933, %v1081_v12  }
 0x1ff   : > { %v564_v9 = vpop.permute.xlu1 %563 }
 0x200   : > { %v567_v10 = vrot.slane %v564_v9, 4 }
 0x202   : > { %v569_v13 = vsel %vm354_vm1, %v564_v9, %v567_v10 }
 0x203   : > { %573 = vst [vmem:[#allocation3 + $0x20] sm:$0xf] %v569_v13  ;;  %v548_v14 = vpop.permute.xlu1 %547  ;;  %v566_v15 = vpop.permute.xlu0 %565 }
 0x204   : > { %v551_v16 = vrot.slane %v548_v14, 4  ;;  %v568_v17 = vrot.slane %v566_v15, 4 }
 0x206   : > { %v553_v18 = vsel %vm337_vm2, %v548_v14, %v551_v16  ;;  %v570_v19 = vsel %vm354_vm1, %v566_v15, %v568_v17 }
 0x207   : > { %557 = vst [vmem:[#allocation3 + $0x18] sm:$0xf] %v553_v18  ;;  %574 = vst [vmem:[#allocation3 + $0x24] sm:$0xf] %v570_v19  ;;  %v532_v11 = vpop.permute.xlu1 %531  ;;  %v550_v20 = vpop.permute.xlu0 %549 }
 0x208   : > { %v535_v21 = vrot.slane %v532_v11, 4  ;;  %v552_v22 = vrot.slane %v550_v20, 4 }
 0x20a   : > { %v537_v12 = vsel %vm320_vm3, %v532_v11, %v535_v21  ;;  %v554_v23 = vsel %vm337_vm2, %v550_v20, %v552_v22 }
 0x20b   : > { %541 = vst [vmem:[#allocation3 + $0x10] sm:$0xf] %v537_v12  ;;  %558 = vst [vmem:[#allocation3 + $0x1c] sm:$0xf] %v554_v23  ;;  %v516_v24 = vpop.permute.xlu1 %515  ;;  %v534_v25 = vpop.permute.xlu0 %533 }
 0x20c   : > { %v519_v26 = vrot.slane %v516_v24, 4  ;;  %v536_v27 = vrot.slane %v534_v25, 4 }
 0x20e   : > { %v521_v28 = vsel %vm303_vm4, %v516_v24, %v519_v26  ;;  %v538_v29 = vsel %vm320_vm3, %v534_v25, %v536_v27  ;;  %v942_v30 = vld [vmem:[#allocation3 + $0x20] sm:$0xff]  }
 0x20f   : > { %525 = vst [vmem:[#allocation3 + $0x8] sm:$0xf] %v521_v28  ;;  %542 = vst [vmem:[#allocation3 + $0x14] sm:$0xf] %v538_v29  ;;  %v500_v31 = vpop.permute.xlu1 %499  ;;  %v518_v32 = vpop.permute.xlu0 %517  ;;  %879 = vmatpush3.bf16.msra.mxu1 %v942_v30 }
 0x210   : > { %v503_v33 = vrot.slane %v500_v31, 4  ;;  %v520_v34 = vrot.slane %v518_v32, 4  ;;  %880 = vmatprep.subr.bf16.mxu1 %v973_v5 }
 0x212   : > { %v505_v35 = vsel %vm286_vm5, %v500_v31, %v503_v33  ;;  %v522_v36 = vsel %vm303_vm4, %v518_v32, %v520_v34  ;;  %v943_v37 = vld [vmem:[#allocation3 + $0x18] sm:$0xff]  }
 0x213   : > { %509 = vst [vmem:[#allocation3] sm:$0xf] %v505_v35  ;;  %526 = vst [vmem:[#allocation3 + $0xc] sm:$0xf] %v522_v36  ;;  %v502_v38 = vpop.permute.xlu0 %501  ;;  %881 = vmatpush3.bf16.msra.mxu1 %v943_v37 }
 0x214   : > { %v504_v39 = vrot.slane %v502_v38, 4  ;;  %882 = vmatprep.subr.bf16.mxu1 %v973_v5 }
 0x216   : > { %v506_v40 = vsel %vm286_vm5, %v502_v38, %v504_v39  ;;  %v944_v41 = vld [vmem:[#allocation3 + $0x10] sm:$0xff]  }
 0x217   : > { %510 = vst [vmem:[#allocation3 + $0x4] sm:$0xf] %v506_v40  ;;  %883 = vmatpush3.bf16.msra.mxu1 %v944_v41 }
 0x218   : > { %884 = vmatprep.subr.bf16.mxu1 %v973_v5 }
 0x21a   : > { %v945_v42 = vld [vmem:[#allocation3 + $0x8] sm:$0xff]  }
 0x21b   : > { %885 = vmatpush3.bf16.msra.mxu1 %v945_v42 }
 0x21c   : > { %886 = vmatprep.subr.bf16.mxu1 %v973_v5  ;;  %v595_v45 = vpop.permute.xlu1 %594 }
 0x21e   : > { %v946_v43 = vld [vmem:[#allocation3] sm:$0xff]  }
 0x21f   : > { %887 = vmatpush3.bf16.msra.mxu1 %v946_v43 }
 0x220   : > { %v599_v47 = vpop.permute.xlu0 %598 }
 0x221   : > { %v690_v46 = vpop.permute.xlu1 %689 }
 0x222   : > { %889 = vmatmul.mubr.msk.bf16.vlgmr.msra.gmra.mxu1 %vm430_vm6, %v947_v44 }
 0x225   : > { %v694_v52 = vpop.permute.xlu1 %693  ;;  %v700_v5 = vpop.permute.xlu0 %699 }
 0x22a   : > { %v704_v59 = vpop.permute.xlu1 %703 }
 0x2e2   : > { %v679_v48 = vpop.f32.mrf.mxu1 }
 0x2e3   : > { %v680_v49 = vadd.f32 %v679_v48, %v595_v45 }
 0x2e4   : > { %v890_v50 = vpop.f32.mrf.mxu1 }
 0x2e5   : > { %v686_v51 = vmax.f32 %v680_v49, 0.0 }
 0x2e6   : > { %v682_v53 = vpop.f32.mrf.mxu1 }
 0x2e7   : > { %v683_v54 = vadd.f32 %v682_v53, %v599_v47  ;;  %v696_v55 = vmul.f32 %v690_v46, %v686_v51 }
 0x2e8   : > { %v891_v56 = vpop.f32.mrf.mxu1 }
 0x2e9   : > { %v687_v57 = vmax.f32 %v683_v54, 0.0  ;;  %v706_v58 = vadd.f32 %v700_v5, %v696_v55 }
 0x2eb   : > { %708 = vst [vmem:[%s265_s11] sm:$0xff] %v706_v58  ;;  %v697_v60 = vmul.f32 %v694_v52, %v687_v57  ;;  %716 = sbr.rel (!%p1043_p5) target bundleno = 760 (0x2f8), region = 85 }
 0x2ed   : > { %v707_v61 = vadd.f32 %v704_v59, %v697_v60 }
 0x2ef   : > { %709 = vst [vmem:[%s265_s11 + $0x8] sm:$0xff] %v707_v61 }
 0x2f2   : > { %v749_v62 = vld [vmem:[%s265_s11] sm:$0xff] }
 0x2f3   : > { %750 = vst [vmem:[%s718_s13] sm:$0xff] %v749_v62 }
 0x2f6   : > { %v751_v63 = vld [vmem:[%s265_s11 + $0x8] sm:$0xff] }
 0x2f7   : > { %752 = vst [vmem:[%s718_s13 + $0x10] sm:$0xff] %v751_v63 }
 0x2f8 PF: > { %p12_p10 = scmp.ge.s32.totalorder %s1030_s22, 4   ;;  %s1167_s18 = smov %s966_s19 }
 0x2f9   : > { %s1168_s19 = smov %s1041_s25  ;;  %s1169_s20 = smov %s1030_s22 }
 0x2fa   :  { %14 = sbr.rel (!%p12_p10) target bundleno = 2 (0x2), region = 154 }

</bundles_post_ra>
